<compile_context>
chip_gen: v7x
topology: tpu7x:2x2x1
jax: 0.10.0
libtpu: 0.0.40
codegen_flags: <defaults>
</compile_context>

<pallas_src>
import math

import jax
import jax.numpy as jnp
from jax import lax
from jax.experimental import pallas as pl
from jax.experimental.pallas import tpu as pltpu

_LANES = 128
_DEFAULT_TILE_ROWS = 8192      # 8192 * 128 = 1M elements (4 MiB f32) per block
_GROUP_ROWS = 512              # inner fold granularity (~256 KiB f32 temps)
_MIN_KERNEL_ELEMENTS = 1024    # below this, a plain-jnp reduction is cheaper
_VMEM_LIMIT_BYTES = 32 * 1024 * 1024
_SMOOTH = 1.0


def _round_down(x, m):
    return (x // m) * m


def _num_tensorcores():
    """2 on v7x (2 TensorCores / chip), else 1.  Conservative on failure."""
    try:
        kind = jax.devices()[0].device_kind.lower()
    except Exception:
        return 1
    return 2 if ("v7" in kind or "7x" in kind) else 1


def _partial_sums(p, t):
    p = p.astype(jnp.float32)
    t = t.astype(jnp.float32)
    return jnp.sum(p * t), jnp.sum(p), jnp.sum(t)


@jax.jit
def dice_loss(pred, target):
    """Forward pass of the PyTorch `Dice` module (returns the scalar loss)."""
    assert pred.shape == target.shape
    total = math.prod(pred.shape)

    # Keep HBM traffic minimal: floats stream through narrow and are cast to
    # f32 inside the kernel; only non-float inputs get converted on the host.
    if not jnp.issubdtype(pred.dtype, jnp.floating):
        pred = pred.astype(jnp.float32)
    if not jnp.issubdtype(target.dtype, jnp.floating):
        target = target.astype(jnp.float32)

    # Tiny inputs: launch overhead dominates; reduce directly in JAX.
    if total < _MIN_KERNEL_ELEMENTS:
        inter, psum, tsum = _partial_sums(pred.reshape(-1), target.reshape(-1))
        return 1.0 - (2.0 * inter + _SMOOTH) / (psum + tsum + _SMOOTH)

    # ---- lane-dense (rows, 128) view, no bulk copies -----------------------
    pred_flat = pred.reshape(-1)
    tgt_flat = target.reshape(-1)
    tail = total % _LANES
    if tail:
        # Only misaligned totals pay a (sum-neutral) zero pad of < 128 elems.
        pad = _LANES - tail
        pred_flat = jnp.pad(pred_flat, (0, pad))
        tgt_flat = jnp.pad(tgt_flat, (0, pad))
    rows = pred_flat.shape[0] // _LANES          # >= 8 given the min-size gate
    pred2d = pred_flat.reshape(rows, _LANES)     # contiguous reshape: no copy
    tgt2d = tgt_flat.reshape(rows, _LANES)

    # ---- tiling (static, trace-time) ---------------------------------------
    if rows >= _DEFAULT_TILE_ROWS:
        tile_rows, group_rows = _DEFAULT_TILE_ROWS, _GROUP_ROWS
    elif rows >= _GROUP_ROWS:
        tile_rows, group_rows = _round_down(rows, _GROUP_ROWS), _GROUP_ROWS
    else:
        tile_rows = _round_down(rows, 8)
        group_rows = tile_rows
    n_groups = tile_rows // group_rows
    num_full_tiles = rows // tile_rows           # >= 1 here

    ncores = _num_tensorcores()
    if ncores > num_full_tiles:
        ncores = 1
    tiles_per_core = num_full_tiles // ncores    # floor: no tile ever overhangs
    rows_main = tiles_per_core * ncores * tile_rows

    # ---- kernel -------------------------------------------------------------
    def kernel(pred_ref, tgt_ref, out_ref):
        k = pl.program_id(1)

        @pl.when(k == 0)
        def _():
            out_ref[...] = jnp.zeros_like(out_ref)

        def fold(g, carry):
            acc_pt, acc_p, acc_t = carry
            r0 = pl.multiple_of(g * group_rows, group_rows)
            p = pred_ref[pl.ds(r0, group_rows), :].astype(jnp.float32)
            t = tgt_ref[pl.ds(r0, group_rows), :].astype(jnp.float32)
            # Tile-aligned regroup (stays on (8,128) vreg boundaries); the
            # axis-0 sums below are pure VPU vreg adds (no XLU).
            p3 = p.reshape(group_rows // 8, 8, _LANES)
            t3 = t.reshape(group_rows // 8, 8, _LANES)
            return (acc_pt + jnp.sum(p3 * t3, axis=0),
                    acc_p + jnp.sum(p3, axis=0),
                    acc_t + jnp.sum(t3, axis=0))

        z = jnp.zeros((8, _LANES), jnp.float32)
        acc_pt, acc_p, acc_t = lax.fori_loop(
            0, n_groups, fold, (z, z, z), unroll=min(8, n_groups))

        out_ref[0, 0, :, :] += acc_pt
        out_ref[0, 1, :, :] += acc_p
        out_ref[0, 2, :, :] += acc_t

    in_map = lambda c, k: (c * tiles_per_core + k, 0)
    out_map = lambda c, k: (c, 0, 0, 0)
    core_sem = pltpu.CORE_PARALLEL if ncores > 1 else pltpu.ARBITRARY

    partials = pl.pallas_call(
        kernel,
        out_shape=jax.ShapeDtypeStruct((ncores, 3, 8, _LANES), jnp.float32),
        grid_spec=pltpu.PrefetchScalarGridSpec(
            num_scalar_prefetch=0,
            grid=(ncores, tiles_per_core),
            in_specs=[
                pl.BlockSpec((tile_rows, _LANES), in_map),
                pl.BlockSpec((tile_rows, _LANES), in_map),
            ],
            out_specs=pl.BlockSpec((1, 3, 8, _LANES), out_map),
        ),
        compiler_params=pltpu.CompilerParams(
            dimension_semantics=(core_sem, pltpu.ARBITRARY),
            vmem_limit_bytes=_VMEM_LIMIT_BYTES,
        ),
    )(pred2d, tgt2d)

    # Tiny final cross-lane/core reduction in plain JAX.
    inter = jnp.sum(partials[:, 0])
    psum = jnp.sum(partials[:, 1])
    tsum = jnp.sum(partials[:, 2])

    # Sub-tile remainder (< one tile of rows): same HBM bytes, just reduced by
    # a small fused XLA op instead of the kernel.
    if rows_main < rows:
        ri, rp, rt = _partial_sums(pred2d[rows_main:], tgt2d[rows_main:])
        inter, psum, tsum = inter + ri, psum + rp, tsum + rt

    return 1.0 - (2.0 * inter + _SMOOTH) / (psum + tsum + _SMOOTH)


def _reference_dice(pred, target):
    """Pure-JAX reference matching the PyTorch semantics."""
    num = pred.shape[0]
    m1 = pred.reshape(num, -1).astype(jnp.float32)
    m2 = target.reshape(num, -1).astype(jnp.float32)
    inter = jnp.sum(m1 * m2)
    return 1.0 - (2.0 * inter + 1.0) / (jnp.sum(m1) + jnp.sum(m2) + 1.0)


if __name__ == "__main__":
    key = jax.random.PRNGKey(0)

    shapes = [
        (2, 4, 16, 16),    # primary example (lane-aligned, single tile)
        (3, 5, 57, 33),    # misaligned total: <128-elem pad + JAX remainder
        (2, 8, 96, 130),   # several 512-row groups + sub-tile remainder
    ]

    ok = True
    for shape in shapes:
        key, k1, k2 = jax.random.split(key, 3)
        pred = jax.nn.sigmoid(jax.random.normal(k1, shape, dtype=jnp.float32))
        target = (jax.random.uniform(k2, shape) > 0.5).astype(jnp.float32)

        loss = jax.block_until_ready(dice_loss(pred, target))
        ref = jax.block_until_ready(_reference_dice(pred, target))
        if not jnp.allclose(loss, ref, rtol=1e-5, atol=1e-5):
            ok = False
            print(f"MISMATCH shape={shape}: kernel={loss} ref={ref}")

    if ok:
        print("KERNEL_OK")
</pallas_src>

<mosaic_0001>
module attributes {stable_mosaic.version = 11 : i64} {
  func.func @kernel(%arg0: i32, %arg1: i32, %arg2: memref<16x128xf32, #tpu.memory_space<vmem>>, %arg3: memref<16x128xf32, #tpu.memory_space<vmem>>, %arg4: memref<1x3x8x128xf32, #tpu.memory_space<vmem>>) attributes {dimension_semantics = [#tpu.dimension_semantics<arbitrary>, #tpu.dimension_semantics<arbitrary>], iteration_bounds = array<i64: 1, 1>, scalar_prefetch = 0 : i64, scratch_operands = 0 : i64, tpu.core_type = #tpu.core_type<tc>, window_params = [{transform_indices = @transform_0, window_bounds = array<i64: 16, 128>}, {transform_indices = @transform_1, window_bounds = array<i64: 16, 128>}, {transform_indices = @transform_2, window_bounds = array<i64: 1, 3, 8, 128>}]} {
    %c0_i32 = arith.constant 0 : i32
    %0 = arith.cmpi eq, %arg1, %c0_i32 : i32
    %1 = arith.extui %0 : i1 to i32
    %c0_i32_0 = arith.constant 0 : i32
    %2 = arith.cmpi ne, %1, %c0_i32_0 : i32
    scf.if %2 {
      %cst_28 = arith.constant 0.000000e+00 : f32
      %37 = vector.broadcast %cst_28 : f32 to vector<1x3x8x128xf32>
      %c0_29 = arith.constant 0 : index
      %c0_30 = arith.constant 0 : index
      %c0_31 = arith.constant 0 : index
      %c0_32 = arith.constant 0 : index
      %38 = vector.load %arg4[%c0_29, %c0_30, %c0_31, %c0_32] : memref<1x3x8x128xf32, #tpu.memory_space<vmem>>, vector<1x3x8x128xf32>
      tpu.vector_store %arg4[%c0_29, %c0_30, %c0_31, %c0_32], %37 {strides = array<i32>} : memref<1x3x8x128xf32, #tpu.memory_space<vmem>>, vector<1x3x8x128xf32>,
    } else {
    }
    %cst = arith.constant 0.000000e+00 : f32
    %3 = vector.broadcast %cst : f32 to vector<8x128xf32>
    %c0_i32_1 = arith.constant 0 : i32
    %c16_i32 = arith.constant 16 : i32
    %4 = arith.muli %c0_i32_1, %c16_i32 : i32
    %5 = tpu.assume_multiple %4, 16 : i32
    %6 = arith.index_cast %5 : i32 to index
    %c0 = arith.constant 0 : index
    %7 = vector.load %arg2[%6, %c0] : memref<16x128xf32, #tpu.memory_space<vmem>>, vector<16x128xf32>
    %8 = arith.index_cast %5 : i32 to index
    %c0_2 = arith.constant 0 : index
    %9 = vector.load %arg3[%8, %c0_2] : memref<16x128xf32, #tpu.memory_space<vmem>>, vector<16x128xf32>
    %10 = vector.shape_cast %7 : vector<16x128xf32> to vector<2x8x128xf32>
    %11 = vector.shape_cast %9 : vector<16x128xf32> to vector<2x8x128xf32>
    %12 = arith.mulf %10, %11 : vector<2x8x128xf32>
    %cst_3 = arith.constant dense<0.000000e+00> : vector<8x128xf32>
    %13 = vector.multi_reduction <add>, %12, %cst_3 [0] : vector<2x8x128xf32> to vector<8x128xf32>
    %14 = arith.addf %3, %13 : vector<8x128xf32>
    %cst_4 = arith.constant dense<0.000000e+00> : vector<8x128xf32>
    %15 = vector.multi_reduction <add>, %10, %cst_4 [0] : vector<2x8x128xf32> to vector<8x128xf32>
    %16 = arith.addf %3, %15 : vector<8x128xf32>
    %cst_5 = arith.constant dense<0.000000e+00> : vector<8x128xf32>
    %17 = vector.multi_reduction <add>, %11, %cst_5 [0] : vector<2x8x128xf32> to vector<8x128xf32>
    %18 = arith.addf %3, %17 : vector<8x128xf32>
    %c1_i32 = arith.constant 1 : i32
    %c0_6 = arith.constant 0 : index
    %c0_7 = arith.constant 0 : index
    %c0_8 = arith.constant 0 : index
    %c0_9 = arith.constant 0 : index
    %19 = vector.load %arg4[%c0_6, %c0_7, %c0_8, %c0_9] : memref<1x3x8x128xf32, #tpu.memory_space<vmem>>, vector<1x1x8x128xf32>
    %20 = vector.shape_cast %19 : vector<1x1x8x128xf32> to vector<8x128xf32>
    %21 = arith.addf %20, %14 : vector<8x128xf32>
    %c0_10 = arith.constant 0 : index
    %c0_11 = arith.constant 0 : index
    %c0_12 = arith.constant 0 : index
    %c0_13 = arith.constant 0 : index
    %22 = vector.load %arg4[%c0_10, %c0_11, %c0_12, %c0_13] : memref<1x3x8x128xf32, #tpu.memory_space<vmem>>, vector<1x1x8x128xf32>
    %23 = vector.shape_cast %22 : vector<1x1x8x128xf32> to vector<8x128xf32>
    %24 = vector.shape_cast %21 : vector<8x128xf32> to vector<1x1x8x128xf32>
    tpu.vector_store %arg4[%c0_10, %c0_11, %c0_12, %c0_13], %24 {strides = array<i32>} : memref<1x3x8x128xf32, #tpu.memory_space<vmem>>, vector<1x1x8x128xf32>,
    %c0_14 = arith.constant 0 : index
    %c1 = arith.constant 1 : index
    %c0_15 = arith.constant 0 : index
    %c0_16 = arith.constant 0 : index
    %25 = vector.load %arg4[%c0_14, %c1, %c0_15, %c0_16] : memref<1x3x8x128xf32, #tpu.memory_space<vmem>>, vector<1x1x8x128xf32>
    %26 = vector.shape_cast %25 : vector<1x1x8x128xf32> to vector<8x128xf32>
    %27 = arith.addf %26, %16 : vector<8x128xf32>
    %c0_17 = arith.constant 0 : index
    %c1_18 = arith.constant 1 : index
    %c0_19 = arith.constant 0 : index
    %c0_20 = arith.constant 0 : index
    %28 = vector.load %arg4[%c0_17, %c1_18, %c0_19, %c0_20] : memref<1x3x8x128xf32, #tpu.memory_space<vmem>>, vector<1x1x8x128xf32>
    %29 = vector.shape_cast %28 : vector<1x1x8x128xf32> to vector<8x128xf32>
    %30 = vector.shape_cast %27 : vector<8x128xf32> to vector<1x1x8x128xf32>
    tpu.vector_store %arg4[%c0_17, %c1_18, %c0_19, %c0_20], %30 {strides = array<i32>} : memref<1x3x8x128xf32, #tpu.memory_space<vmem>>, vector<1x1x8x128xf32>,
    %c0_21 = arith.constant 0 : index
    %c2 = arith.constant 2 : index
    %c0_22 = arith.constant 0 : index
    %c0_23 = arith.constant 0 : index
    %31 = vector.load %arg4[%c0_21, %c2, %c0_22, %c0_23] : memref<1x3x8x128xf32, #tpu.memory_space<vmem>>, vector<1x1x8x128xf32>
    %32 = vector.shape_cast %31 : vector<1x1x8x128xf32> to vector<8x128xf32>
    %33 = arith.addf %32, %18 : vector<8x128xf32>
    %c0_24 = arith.constant 0 : index
    %c2_25 = arith.constant 2 : index
    %c0_26 = arith.constant 0 : index
    %c0_27 = arith.constant 0 : index
    %34 = vector.load %arg4[%c0_24, %c2_25, %c0_26, %c0_27] : memref<1x3x8x128xf32, #tpu.memory_space<vmem>>, vector<1x1x8x128xf32>
    %35 = vector.shape_cast %34 : vector<1x1x8x128xf32> to vector<8x128xf32>
    %36 = vector.shape_cast %33 : vector<8x128xf32> to vector<1x1x8x128xf32>
    tpu.vector_store %arg4[%c0_24, %c2_25, %c0_26, %c0_27], %36 {strides = array<i32>} : memref<1x3x8x128xf32, #tpu.memory_space<vmem>>, vector<1x1x8x128xf32>,
    return
  }
  func.func @transform_0(%arg0: i32, %arg1: i32) -> (i32, i32) {
    %c1_i32 = arith.constant 1 : i32
    %0 = arith.muli %arg0, %c1_i32 : i32
    %1 = arith.addi %0, %arg1 : i32
    %c0_i32 = arith.constant 0 : i32
    %c0_i32_0 = arith.constant 0 : i32
    return %1, %c0_i32 : i32, i32
  }
  func.func @transform_1(%arg0: i32, %arg1: i32) -> (i32, i32) {
    %c1_i32 = arith.constant 1 : i32
    %0 = arith.muli %arg0, %c1_i32 : i32
    %1 = arith.addi %0, %arg1 : i32
    %c0_i32 = arith.constant 0 : i32
    %c0_i32_0 = arith.constant 0 : i32
    return %1, %c0_i32 : i32, i32
  }
  func.func @transform_2(%arg0: i32, %arg1: i32) -> (i32, i32, i32, i32) {
    %c0_i32 = arith.constant 0 : i32
    %c0_i32_0 = arith.constant 0 : i32
    %c0_i32_1 = arith.constant 0 : i32
    %c0_i32_2 = arith.constant 0 : i32
    return %arg0, %c0_i32, %c0_i32_0, %c0_i32_1 : i32, i32, i32, i32
  }
}

</mosaic_0001>

<bundles_post_ra>
// kernel: dice_loss.1
= control target key start
LH: loop header
LB: loop body
LE: loop exit
PB: predicated region body
PF: predicated region fallthrough
CT: control target
= control target key end

     0   :  { %s142_s0 = inlined_call_operand.vmem [shape: f32[16,128], index: 0, kind: input, shape index: {}]   ;;  %s143_s1 = inlined_call_operand.vmem [shape: f32[16,128], index: 1, kind: input, shape index: {}]   ;;  %s144_s2 = inlined_call_operand.vmem [shape: f32[1,3,8,128], index: 2, kind: output, shape index: {}]  }
   0x1   :  { %v62_v0 = vld [vmem:[%s142_s0] sm:$0xff]  ;;  %v63_v1 = vld [vmem:[%s142_s0 + $0x8] sm:$0xff] }
   0x2   :  { %v64_v2 = vld [vmem:[%s143_s1] sm:$0xff]  ;;  %v65_v3 = vld [vmem:[%s143_s1 + $0x8] sm:$0xff]  ;;  %v70_v5 = vadd.f32 %v63_v1, %v62_v0 }
   0x3   :  { %v66_v4 = vmul.f32 %v64_v2, %v62_v0  ;;  %v67_v6 = vmul.f32 %v65_v3, %v63_v1  ;;  %v72_v7 = vadd.f32 %v65_v3, %v64_v2 }
   0x4   :  { %102 = vst [vmem:[%s144_s2 + $0x8] sm:$0xff] %v70_v5 }
   0x5   :  { %v68_v8 = vadd.f32 %v67_v6, %v66_v4  ;;  %104 = vst [vmem:[%s144_s2 + $0x10] sm:$0xff] %v72_v7 }
   0x7   :  { %76 = vst [vmem:[%s144_s2] sm:$0xff] %v68_v8 }

</bundles_post_ra>
